<compile_context>
chip_gen: v7x
topology: tpu7x:2x2x1
jax: 0.10.0
libtpu: 0.0.40
codegen_flags: <defaults>
</compile_context>

<pallas_src>
import math
import functools

import jax
import jax.numpy as jnp
from jax.experimental import pallas as pl
from jax.experimental.pallas import tpu as pltpu


def _round8(x):
    return (x + 7) // 8 * 8


def _round_up(x, m):
    return (x + m - 1) // m * m


# ----------------------------------------------------------------------------
# Fused forward kernel (single invocation, no grid)
# ----------------------------------------------------------------------------

def _fused_policy_kernel(up_ref, hc_ref, slab_ref, sa_ref, cand_ref, *,
                         B, H, BH, U, I, F, HID, n_head, head_dim,
                         pack_w, eps,
                         o_wup, o_wq, o_whc, o_hm, o_was, o_wa, o_b):
    f32 = jnp.float32
    AW = pack_w - F

    # --- static, 8-row-aligned views into the single packed parameter slab (free) ---
    w_up = slab_ref[o_wup:o_wup + U, :HID + F]       # [w1 (BN folded) | state_w_user]
    w_q  = slab_ref[o_wq:o_wq + HID, :F]             # dnn_w2 ∘ Wq
    w_hc = slab_ref[o_whc:o_whc + I, :3 * F]         # [item∘Wk | item∘Wv | item]
    hm   = slab_ref[o_hm:o_hm + F, :n_head]          # head-block indicator (F, n_head)
    w_as = slab_ref[o_was:o_was + F, :F]             # out_proj ∘ state_linear (attn part)
    w_a  = slab_ref[o_wa:o_wa + F, :AW]              # action head, lane-padded to AW
    b_up = slab_ref[o_b + 0:o_b + 1, :HID + F]       # [b1_fold | bs_fold]
    b_q  = slab_ref[o_b + 1:o_b + 2, :F]
    b_hc = slab_ref[o_b + 2:o_b + 3, :3 * F]
    ln_g = slab_ref[o_b + 3:o_b + 4, :F]
    ln_b = slab_ref[o_b + 4:o_b + 5, :F]
    b_a  = slab_ref[o_b + 5:o_b + 6, :AW]

    up = up_ref[...]                                                  # (B, U)

    # --- user_profile -> [DNN hidden | state_linear user branch] in ONE matmul ---
    upw = jnp.dot(up, w_up, preferred_element_type=f32) + b_up        # (B, HID+F)
    hid = jnp.maximum(upw[:, :HID], 0.0)                              # Linear + BN(eval) + ReLU
    st_user = upw[:, HID:]                                            # up@Wsu + bs_fold

    # --- user_emb -> Q projection (dnn_w2 and Wq pre-composed) ---
    q = jnp.dot(hid, w_q, preferred_element_type=f32) + b_q           # (B, F)

    # --- [history ; candidates] features -> [K | V | cand item emb] in ONE matmul ---
    hc = jnp.dot(hc_ref[...], w_hc, preferred_element_type=f32) + b_hc   # (BH+BcL, 3F)
    k = hc[:BH, :F].reshape(B, H, F)
    v = hc[:BH, F:2 * F].reshape(B, H, F)
    cand_ref[...] = hc[BH:, 2 * F:3 * F]                              # candidate item embeddings

    # --- multi-head attention: all (batch, key, head) scores in one MXU matmul ---
    inv = 1.0 / math.sqrt(head_dim)
    qk = (q.reshape(B, 1, F) * k).reshape(BH, F)
    s = (jnp.dot(qk, hm, preferred_element_type=f32) * inv).reshape(B, H, n_head)
    s = s - jnp.max(s, axis=1, keepdims=True)                         # softmax over history
    p = jnp.exp(s)
    p = p / jnp.sum(p, axis=1, keepdims=True)                         # (B, H, n_head)
    # expand per-head probs back to per-feature lanes (contiguous head blocks)
    p_exp = jax.lax.dot_general(p.reshape(BH, n_head), hm,
                                (((1,), (1,)), ((), ())),
                                preferred_element_type=f32).reshape(B, H, F)
    attn = jnp.sum(p_exp * v, axis=1)                                 # (B, F) pre-out_proj

    # --- (out_proj ∘ state_linear) attn branch + user branch, then LayerNorm ---
    st = jnp.dot(attn, w_as, preferred_element_type=f32) + st_user
    mu = jnp.mean(st, axis=-1, keepdims=True)
    var = jnp.mean(jnp.square(st - mu), axis=-1, keepdims=True)
    st = (st - mu) * jax.lax.rsqrt(var + eps) * ln_g + ln_b           # state_emb (B, F)

    # --- action head (lane-padded) + single lane-dense packed store ---
    act = jnp.dot(st, w_a, preferred_element_type=f32) + b_a          # (B, pack_w - F)
    sa_ref[...] = jnp.concatenate([st, act], axis=-1)                 # (B, pack_w)


def fused_policy_call(prep, user_profile, history, candidates):
    """Single pallas_call (no grid) for the whole OneStagePolicy forward."""
    c = prep['consts']
    F, HID, A, PACK_W = c['F'], c['HID'], c['A'], c['PACK_W']
    B, U = user_profile.shape
    _, H, I = history.shape
    Bc, L, _ = candidates.shape

    # single stacked feature input: history rows then candidate rows (one DMA)
    hc = jnp.concatenate([history.reshape(B * H, I),
                          candidates.reshape(Bc * L, I)], axis=0)

    vmem = pl.BlockSpec(memory_space=pltpu.MemorySpace.VMEM)
    kernel = functools.partial(
        _fused_policy_kernel,
        B=B, H=H, BH=B * H, U=U, I=I, F=F, HID=HID,
        n_head=c['n_head'], head_dim=c['head_dim'],
        pack_w=PACK_W, eps=c['eps'],
        o_wup=c['o_wup'], o_wq=c['o_wq'], o_whc=c['o_whc'],
        o_hm=c['o_hm'], o_was=c['o_was'], o_wa=c['o_wa'], o_b=c['o_b'])

    sa, cand = pl.pallas_call(
        kernel,
        in_specs=[vmem, vmem, vmem],
        out_specs=[vmem, vmem],
        out_shape=[jax.ShapeDtypeStruct((B, PACK_W), jnp.float32),
                   jax.ShapeDtypeStruct((Bc * L, F), jnp.float32)],
    )(user_profile, hc, prep['slab'])

    state_emb = sa[:, :F]
    action_emb = sa[:, F:F + A]
    return state_emb, action_emb, cand.reshape(Bc, L, F)


# ----------------------------------------------------------------------------
# Parameters (deterministic synthetic init, torch layouts) and trace-time folding
# ----------------------------------------------------------------------------

def init_params(key, user_dim, item_dim, f_dim, hidden_dim, action_dim):
    keys = jax.random.split(key, 8)

    def dense(k, out_d, in_d, scale=0.1):
        return scale * jax.random.normal(k, (out_d, in_d), jnp.float32)

    p = {}
    # DNN (user_profile_encoder): Linear -> BatchNorm1d -> ReLU -> Dropout -> Linear
    p['dnn_w1'] = dense(keys[0], hidden_dim, user_dim)
    p['dnn_b1'] = jnp.zeros((hidden_dim,), jnp.float32)
    p['bn_gamma'] = jnp.ones((hidden_dim,), jnp.float32)
    p['bn_beta'] = jnp.zeros((hidden_dim,), jnp.float32)
    p['bn_mean'] = jnp.zeros((hidden_dim,), jnp.float32)   # buffer
    p['bn_var'] = jnp.ones((hidden_dim,), jnp.float32)     # buffer
    p['dnn_w2'] = dense(keys[1], f_dim, hidden_dim)
    p['dnn_b2'] = jnp.zeros((f_dim,), jnp.float32)
    # item_emb_layer
    p['item_w'] = dense(keys[2], f_dim, item_dim)
    p['item_b'] = jnp.zeros((f_dim,), jnp.float32)
    # nn.MultiheadAttention(f_dim, n_head, batch_first=True)
    p['in_proj_w'] = dense(keys[3], 3 * f_dim, f_dim)
    p['in_proj_b'] = jnp.zeros((3 * f_dim,), jnp.float32)
    p['out_proj_w'] = dense(keys[4], f_dim, f_dim)
    p['out_proj_b'] = jnp.zeros((f_dim,), jnp.float32)
    # state_linear + state_norm
    p['state_w'] = dense(keys[5], f_dim, f_dim + user_dim)
    p['state_b'] = jnp.zeros((f_dim,), jnp.float32)
    p['ln_gamma'] = jnp.ones((f_dim,), jnp.float32)
    p['ln_beta'] = jnp.zeros((f_dim,), jnp.float32)
    # action_layer (defined only in OneStagePolicy subclasses; see TODO below)
    p['action_w'] = dense(keys[6], action_dim, f_dim)
    p['action_b'] = jnp.zeros((action_dim,), jnp.float32)
    return p


def get_regularization(params):
    """get_regularization(state_encoder, action_layer): sum of mean(p^2) over learnable params."""
    reg_keys = ('dnn_w1', 'dnn_b1', 'bn_gamma', 'bn_beta', 'dnn_w2', 'dnn_b2',
                'item_w', 'item_b', 'in_proj_w', 'in_proj_b',
                'out_proj_w', 'out_proj_b', 'state_w', 'state_b',
                'ln_gamma', 'ln_beta', 'action_w', 'action_b')
    return sum(jnp.mean(jnp.square(params[k])) for k in reg_keys)


def prepare_params(params, *, n_head, eps=1e-5):
    """One-time trace-time folding of the parameter tree into one packed weight slab.

    * BatchNorm(eval) affine folded into dnn_w1/b1.
    * user_emb only feeds Q -> compose dnn_w2∘Wq.
    * hist_emb only feeds K,V; candidates only feed item_emb -> one (I, 3F) weight.
    * out_proj folded into state_linear's attn branch; state_linear split attn/user.
    * dnn first layer and state_linear's user branch merged into one (U, HID+F) weight.
    * action head lane-padded so the packed (state|action) output store is lane-dense.
    * everything packed into one (rows, lanes) f32 slab -> a single input DMA.
    * reg (input-independent) precomputed once here.
    """
    F, HID = params['dnn_w2'].shape
    U = params['dnn_w1'].shape[1]
    I = params['item_w'].shape[1]
    A = params['action_w'].shape[0]
    head_dim = F // n_head

    # BatchNorm (eval) folded into first DNN linear
    bn_scale = params['bn_gamma'] / jnp.sqrt(params['bn_var'] + eps)
    bn_shift = params['bn_beta'] - params['bn_mean'] * bn_scale
    w1_fold = params['dnn_w1'].T * bn_scale[None, :]                 # (U, HID)
    b1_fold = params['dnn_b1'] * bn_scale + bn_shift                 # (HID,)

    wq, wk, wv = jnp.split(params['in_proj_w'], 3, axis=0)           # each (F, F)
    bq, bk, bv = jnp.split(params['in_proj_b'], 3)

    # q = (hid @ dnn_w2.T + dnn_b2) @ wq.T + bq
    wq_fold = params['dnn_w2'].T @ wq.T                              # (HID, F)
    bq_fold = params['dnn_b2'] @ wq.T + bq                           # (F,)

    # history K/V (item∘Wk, item∘Wv) and candidate item_emb share one matmul
    item_w_t = params['item_w'].T                                    # (I, F)
    w_hc = jnp.concatenate([item_w_t @ wk.T, item_w_t @ wv.T, item_w_t], axis=1)   # (I, 3F)
    b_hc = jnp.concatenate([params['item_b'] @ wk.T + bk,
                            params['item_b'] @ wv.T + bv,
                            params['item_b']])                       # (3F,)

    # out_proj folded into attn branch of state_linear; user branch kept separate
    state_w_t = params['state_w'].T                                  # (F+U, F)
    w_as = params['out_proj_w'].T @ state_w_t[:F]                    # (F, F)
    bs_fold = params['out_proj_b'] @ state_w_t[:F] + params['state_b']   # (F,)
    w_su = state_w_t[F:]                                             # (U, F)

    # merge the two user_profile matmuls: [w1_fold | w_su], bias [b1_fold | bs_fold]
    w_up = jnp.concatenate([w1_fold, w_su], axis=1)                  # (U, HID+F)
    b_up = jnp.concatenate([b1_fold, bs_fold])                       # (HID+F,)

    # head-block indicator matrix for batched multi-head attention
    head_mask = (jnp.arange(F)[:, None] // head_dim
                 == jnp.arange(n_head)[None, :]).astype(jnp.float32)  # (F, n_head)

    # action head lane-padded so [state | action] packs to a 128-lane-multiple store
    PACK_W = _round_up(F + A, 128)
    AW = PACK_W - F
    w_a = jnp.zeros((F, AW), jnp.float32).at[:, :A].set(params['action_w'].T)
    b_a = jnp.zeros((AW,), jnp.float32).at[:A].set(params['action_b'])

    # ---- pack every weight/bias into ONE contiguous, lane-padded slab ----
    blocks = [('o_wup', w_up), ('o_wq', wq_fold), ('o_whc', w_hc),
              ('o_hm', head_mask), ('o_was', w_as), ('o_wa', w_a)]
    LW = max(HID + F, 3 * F, AW, F, n_head)
    offs = {}
    r = 0
    for name, m in blocks:
        offs[name] = r
        r += _round8(m.shape[0])
    offs['o_b'] = r
    R = r + 8                                                        # 8 bias rows
    slab = jnp.zeros((R, LW), jnp.float32)
    for name, m in blocks:
        slab = slab.at[offs[name]:offs[name] + m.shape[0], :m.shape[1]].set(m)
    for i, bvec in enumerate([b_up, bq_fold, b_hc,
                              params['ln_gamma'], params['ln_beta'], b_a]):
        slab = slab.at[offs['o_b'] + i, :bvec.shape[0]].set(bvec)

    consts = dict(F=F, HID=HID, U=U, I=I, A=A, n_head=n_head, head_dim=head_dim,
                  PACK_W=PACK_W, eps=eps, **offs)
    return {'slab': slab, 'consts': consts, 'reg': get_regularization(params)}


# ----------------------------------------------------------------------------
# Forward pass
# ----------------------------------------------------------------------------

def one_stage_policy_forward(prep, feed_dict):
    state_emb, action_emb, cand_emb = fused_policy_call(
        prep,
        feed_dict['user_profile'],
        feed_dict['history_features'],
        feed_dict['candidate_features'])
    return {'action_emb': action_emb,
            'state_emb': state_emb,
            'reg': prep['reg'],          # constant w.r.t. inputs; precomputed once
            'item_emb': cand_emb}


# ----------------------------------------------------------------------------
# Demo
# ----------------------------------------------------------------------------

if __name__ == "__main__":
    B, H, L = 2, 8, 6
    USER_DIM, ITEM_DIM, F_DIM, N_HEAD = 8, 16, 32, 4
    HIDDEN_DIM = 128
    # TODO(synk): action_layer / action_dim live in OneStagePolicy subclasses; modeled as
    #             Linear(state_dim -> item_dim + 1) per the score() docstring.
    ACTION_DIM = ITEM_DIM + 1

    key = jax.random.PRNGKey(0)
    k_par, k_up, k_hist, k_cand = jax.random.split(key, 4)

    params = init_params(k_par, USER_DIM, ITEM_DIM, F_DIM, HIDDEN_DIM, ACTION_DIM)
    prep = prepare_params(params, n_head=N_HEAD)   # one-time weight folding + slab + reg

    feed_dict = {
        'user_profile': jax.random.normal(k_up, (B, USER_DIM), jnp.float32),
        'history_features': jax.random.normal(k_hist, (B, H, ITEM_DIM), jnp.float32),
        'candidate_features': jax.random.normal(k_cand, (B, L, ITEM_DIM), jnp.float32),
    }

    out = one_stage_policy_forward(prep, feed_dict)
    out = jax.block_until_ready(out)

    assert out['action_emb'].shape == (B, ACTION_DIM)
    assert out['state_emb'].shape == (B, F_DIM)
    assert out['item_emb'].shape == (B, L, F_DIM)
    assert out['reg'].shape == ()
    assert all(bool(jnp.all(jnp.isfinite(v))) for v in
               (out['action_emb'], out['state_emb'], out['item_emb'], out['reg']))

    print("KERNEL_OK")
</pallas_src>

<mosaic_0001>
module attributes {stable_mosaic.version = 11 : i64} {
  func.func @_fused_policy_kernel(%arg0: memref<2x8xf32, #tpu.memory_space<vmem>>, %arg1: memref<28x16xf32, #tpu.memory_space<vmem>>, %arg2: memref<256x160xf32, #tpu.memory_space<vmem>>, %arg3: memref<2x128xf32, #tpu.memory_space<vmem>>, %arg4: memref<12x32xf32, #tpu.memory_space<vmem>>) attributes {dimension_semantics = [], scalar_prefetch = 0 : i64, scratch_operands = 0 : i64, tpu.core_type = #tpu.core_type<tc>} {
    %c0 = arith.constant 0 : index
    %c0_0 = arith.constant 0 : index
    %0 = vector.load %arg2[%c0, %c0_0] : memref<256x160xf32, #tpu.memory_space<vmem>>, vector<8x160xf32>
    %c8 = arith.constant 8 : index
    %c0_1 = arith.constant 0 : index
    %1 = vector.load %arg2[%c8, %c0_1] : memref<256x160xf32, #tpu.memory_space<vmem>>, vector<128x32xf32>
    %c136 = arith.constant 136 : index
    %c0_2 = arith.constant 0 : index
    %2 = vector.load %arg2[%c136, %c0_2] : memref<256x160xf32, #tpu.memory_space<vmem>>, vector<16x96xf32>
    %c152 = arith.constant 152 : index
    %c0_3 = arith.constant 0 : index
    %3 = vector.load %arg2[%c152, %c0_3] : memref<256x160xf32, #tpu.memory_space<vmem>>, vector<32x4xf32>
    %c184 = arith.constant 184 : index
    %c0_4 = arith.constant 0 : index
    %4 = vector.load %arg2[%c184, %c0_4] : memref<256x160xf32, #tpu.memory_space<vmem>>, vector<32x32xf32>
    %c216 = arith.constant 216 : index
    %c0_5 = arith.constant 0 : index
    %5 = vector.load %arg2[%c216, %c0_5] : memref<256x160xf32, #tpu.memory_space<vmem>>, vector<32x96xf32>
    %c248 = arith.constant 248 : index
    %c0_6 = arith.constant 0 : index
    %6 = vector.load %arg2[%c248, %c0_6] : memref<256x160xf32, #tpu.memory_space<vmem>>, vector<1x160xf32>
    %c249 = arith.constant 249 : index
    %c0_7 = arith.constant 0 : index
    %7 = vector.load %arg2[%c249, %c0_7] : memref<256x160xf32, #tpu.memory_space<vmem>>, vector<1x32xf32>
    %c250 = arith.constant 250 : index
    %c0_8 = arith.constant 0 : index
    %8 = vector.load %arg2[%c250, %c0_8] : memref<256x160xf32, #tpu.memory_space<vmem>>, vector<1x96xf32>
    %c251 = arith.constant 251 : index
    %c0_9 = arith.constant 0 : index
    %9 = vector.load %arg2[%c251, %c0_9] : memref<256x160xf32, #tpu.memory_space<vmem>>, vector<1x32xf32>
    %c252 = arith.constant 252 : index
    %c0_10 = arith.constant 0 : index
    %10 = vector.load %arg2[%c252, %c0_10] : memref<256x160xf32, #tpu.memory_space<vmem>>, vector<1x32xf32>
    %c253 = arith.constant 253 : index
    %c0_11 = arith.constant 0 : index
    %11 = vector.load %arg2[%c253, %c0_11] : memref<256x160xf32, #tpu.memory_space<vmem>>, vector<1x96xf32>
    %c0_12 = arith.constant 0 : index
    %c0_13 = arith.constant 0 : index
    %12 = vector.load %arg0[%c0_12, %c0_13] : memref<2x8xf32, #tpu.memory_space<vmem>>, vector<2x8xf32>
    %cst = arith.constant dense<0.000000e+00> : vector<2x160xf32>
    %13 = tpu.matmul %12, %0, %cst {dimension_numbers = #tpu.dot_dimension_numbers<[1], [0], [0], [1], [0, 0, 1, 1], [], []>} : vector<2x8xf32>, vector<8x160xf32>, vector<2x160xf32> -> vector<2x160xf32>
    %14 = vector.broadcast %6 : vector<1x160xf32> to vector<2x160xf32>
    %15 = arith.addf %13, %14 : vector<2x160xf32>
    %16 = vector.extract_strided_slice %15 {offsets = [0, 0], sizes = [2, 128], strides = [1, 1]} : vector<2x160xf32> to vector<2x128xf32>
    %cst_14 = arith.constant 0.000000e+00 : f32
    %17 = vector.broadcast %cst_14 : f32 to vector<2x128xf32>
    %18 = arith.maximumf %16, %17 : vector<2x128xf32>
    %19 = vector.extract_strided_slice %15 {offsets = [0, 128], sizes = [2, 32], strides = [1, 1]} : vector<2x160xf32> to vector<2x32xf32>
    %cst_15 = arith.constant dense<0.000000e+00> : vector<2x32xf32>
    %20 = tpu.matmul %18, %1, %cst_15 {dimension_numbers = #tpu.dot_dimension_numbers<[1], [0], [0], [1], [0, 0, 1, 1], [], []>} : vector<2x128xf32>, vector<128x32xf32>, vector<2x32xf32> -> vector<2x32xf32>
    %21 = vector.broadcast %7 : vector<1x32xf32> to vector<2x32xf32>
    %22 = arith.addf %20, %21 : vector<2x32xf32>
    %c0_16 = arith.constant 0 : index
    %c0_17 = arith.constant 0 : index
    %23 = vector.load %arg1[%c0_16, %c0_17] : memref<28x16xf32, #tpu.memory_space<vmem>>, vector<28x16xf32>
    %cst_18 = arith.constant dense<0.000000e+00> : vector<28x96xf32>
    %24 = tpu.matmul %23, %2, %cst_18 {dimension_numbers = #tpu.dot_dimension_numbers<[1], [0], [0], [1], [0, 0, 1, 1], [], []>} : vector<28x16xf32>, vector<16x96xf32>, vector<28x96xf32> -> vector<28x96xf32>
    %25 = vector.broadcast %8 : vector<1x96xf32> to vector<28x96xf32>
    %26 = arith.addf %24, %25 : vector<28x96xf32>
    %27 = vector.extract_strided_slice %26 {offsets = [0, 0], sizes = [16, 32], strides = [1, 1]} : vector<28x96xf32> to vector<16x32xf32>
    %28 = vector.shape_cast %27 : vector<16x32xf32> to vector<2x8x32xf32>
    %29 = vector.extract_strided_slice %26 {offsets = [0, 32], sizes = [16, 32], strides = [1, 1]} : vector<28x96xf32> to vector<16x32xf32>
    %30 = vector.shape_cast %29 : vector<16x32xf32> to vector<2x8x32xf32>
    %31 = vector.extract_strided_slice %26 {offsets = [16, 64], sizes = [12, 32], strides = [1, 1]} : vector<28x96xf32> to vector<12x32xf32>
    %c0_19 = arith.constant 0 : index
    %c0_20 = arith.constant 0 : index
    %32 = vector.load %arg4[%c0_19, %c0_20] : memref<12x32xf32, #tpu.memory_space<vmem>>, vector<12x32xf32>
    tpu.vector_store %arg4[%c0_19, %c0_20], %31 {strides = array<i32>} : memref<12x32xf32, #tpu.memory_space<vmem>>, vector<12x32xf32>,
    %33 = vector.shape_cast %22 : vector<2x32xf32> to vector<2x1x32xf32>
    %34 = vector.broadcast %33 : vector<2x1x32xf32> to vector<2x8x32xf32>
    %35 = arith.mulf %34, %28 : vector<2x8x32xf32>
    %36 = vector.shape_cast %35 : vector<2x8x32xf32> to vector<16x32xf32>
    %cst_21 = arith.constant dense<0.000000e+00> : vector<16x4xf32>
    %37 = tpu.matmul %36, %3, %cst_21 {dimension_numbers = #tpu.dot_dimension_numbers<[1], [0], [0], [1], [0, 0, 1, 1], [], []>} : vector<16x32xf32>, vector<32x4xf32>, vector<16x4xf32> -> vector<16x4xf32>
    %cst_22 = arith.constant 0.353553385 : f32
    %38 = vector.broadcast %cst_22 : f32 to vector<16x4xf32>
    %39 = arith.mulf %37, %38 : vector<16x4xf32>
    %40 = vector.shape_cast %39 : vector<16x4xf32> to vector<2x8x4xf32>
    %cst_23 = arith.constant dense<0xFF800000> : vector<2x4xf32>
    %41 = vector.multi_reduction <maximumf>, %40, %cst_23 [1] : vector<2x8x4xf32> to vector<2x4xf32>
    %42 = vector.shape_cast %41 : vector<2x4xf32> to vector<2x1x4xf32>
    %43 = vector.broadcast %42 : vector<2x1x4xf32> to vector<2x8x4xf32>
    %44 = arith.subf %40, %43 : vector<2x8x4xf32>
    %45 = math.exp %44 : vector<2x8x4xf32>
    %cst_24 = arith.constant dense<0.000000e+00> : vector<2x4xf32>
    %46 = vector.multi_reduction <add>, %45, %cst_24 [1] : vector<2x8x4xf32> to vector<2x4xf32>
    %47 = vector.shape_cast %46 : vector<2x4xf32> to vector<2x1x4xf32>
    %48 = vector.broadcast %47 : vector<2x1x4xf32> to vector<2x8x4xf32>
    %49 = arith.divf %45, %48 : vector<2x8x4xf32>
    %50 = vector.shape_cast %49 : vector<2x8x4xf32> to vector<16x4xf32>
    %cst_25 = arith.constant dense<0.000000e+00> : vector<16x32xf32>
    %51 = tpu.matmul %50, %3, %cst_25 {dimension_numbers = #tpu.dot_dimension_numbers<[1], [1], [0], [0], [0, 0, 1, 0], [], []>} : vector<16x4xf32>, vector<32x4xf32>, vector<16x32xf32> -> vector<16x32xf32>
    %52 = vector.shape_cast %51 : vector<16x32xf32> to vector<2x8x32xf32>
    %53 = arith.mulf %52, %30 : vector<2x8x32xf32>
    %cst_26 = arith.constant dense<0.000000e+00> : vector<2x32xf32>
    %54 = vector.multi_reduction <add>, %53, %cst_26 [1] : vector<2x8x32xf32> to vector<2x32xf32>
    %cst_27 = arith.constant dense<0.000000e+00> : vector<2x32xf32>
    %55 = tpu.matmul %54, %4, %cst_27 {dimension_numbers = #tpu.dot_dimension_numbers<[1], [0], [0], [1], [0, 0, 1, 1], [], []>} : vector<2x32xf32>, vector<32x32xf32>, vector<2x32xf32> -> vector<2x32xf32>
    %56 = arith.addf %55, %19 : vector<2x32xf32>
    %cst_28 = arith.constant dense<0.000000e+00> : vector<2xf32>
    %57 = vector.multi_reduction <add>, %56, %cst_28 [1] : vector<2x32xf32> to vector<2xf32>
    %58 = vector.shape_cast %57 : vector<2xf32> to vector<2x1xf32>
    %cst_29 = arith.constant 3.200000e+01 : f32
    %59 = vector.broadcast %cst_29 : f32 to vector<2x1xf32>
    %60 = arith.divf %58, %59 : vector<2x1xf32>
    %61 = vector.broadcast %60 : vector<2x1xf32> to vector<2x32xf32>
    %62 = arith.subf %56, %61 : vector<2x32xf32>
    %63 = arith.mulf %62, %62 : vector<2x32xf32>
    %cst_30 = arith.constant dense<0.000000e+00> : vector<2xf32>
    %64 = vector.multi_reduction <add>, %63, %cst_30 [1] : vector<2x32xf32> to vector<2xf32>
    %65 = vector.shape_cast %64 : vector<2xf32> to vector<2x1xf32>
    %cst_31 = arith.constant 3.200000e+01 : f32
    %66 = vector.broadcast %cst_31 : f32 to vector<2x1xf32>
    %67 = arith.divf %65, %66 : vector<2x1xf32>
    %68 = vector.broadcast %60 : vector<2x1xf32> to vector<2x32xf32>
    %69 = arith.subf %56, %68 : vector<2x32xf32>
    %cst_32 = arith.constant 9.99999974E-6 : f32
    %70 = vector.broadcast %cst_32 : f32 to vector<2x1xf32>
    %71 = arith.addf %67, %70 : vector<2x1xf32>
    %72 = math.rsqrt %71 : vector<2x1xf32>
    %73 = vector.broadcast %72 : vector<2x1xf32> to vector<2x32xf32>
    %74 = arith.mulf %69, %73 : vector<2x32xf32>
    %75 = vector.broadcast %9 : vector<1x32xf32> to vector<2x32xf32>
    %76 = arith.mulf %74, %75 : vector<2x32xf32>
    %77 = vector.broadcast %10 : vector<1x32xf32> to vector<2x32xf32>
    %78 = arith.addf %76, %77 : vector<2x32xf32>
    %cst_33 = arith.constant dense<0.000000e+00> : vector<2x96xf32>
    %79 = tpu.matmul %78, %5, %cst_33 {dimension_numbers = #tpu.dot_dimension_numbers<[1], [0], [0], [1], [0, 0, 1, 1], [], []>} : vector<2x32xf32>, vector<32x96xf32>, vector<2x96xf32> -> vector<2x96xf32>
    %80 = vector.broadcast %11 : vector<1x96xf32> to vector<2x96xf32>
    %81 = arith.addf %79, %80 : vector<2x96xf32>
    %82 = tpu.concatenate %78, %81 in 1 : vector<2x32xf32>, vector<2x96xf32> -> vector<2x128xf32>
    %c0_34 = arith.constant 0 : index
    %c0_35 = arith.constant 0 : index
    %83 = vector.load %arg3[%c0_34, %c0_35] : memref<2x128xf32, #tpu.memory_space<vmem>>, vector<2x128xf32>
    tpu.vector_store %arg3[%c0_34, %c0_35], %82 {strides = array<i32>} : memref<2x128xf32, #tpu.memory_space<vmem>>, vector<2x128xf32>,
    return
  }
}

</mosaic_0001>

<bundles_post_ra>
// kernel: tpu_custom_call.1
= control target key start
LH: loop header
LB: loop body
LE: loop exit
PB: predicated region body
PF: predicated region fallthrough
CT: control target
= control target key end

     0   :  { %10 = vsyncpa [#allocation3], 0  ;;  %vm69_vm0 = vcmask 64512   ;;  %v1084_v3 = vmov 0.0   ;;  %v1085_v7 = vmov 0.0|0.0   ;;  %s1346_s0 = inlined_call_operand.vmem [shape: f32[2,8], index: 0, kind: input, shape index: {}]   ;;  %s1347_s1 = inlined_call_operand.vmem [shape: f32[28,16], index: 1, kind: input, shape index: {}]   ;;  %s1348_s2 = inlined_call_operand.vmem [shape: f32[256,160], index: 2, kind: input, shape index: {}]   ;;  %s1349_s3 = inlined_call_operand.hbm [shape: f32[2,128], index: 3, kind: output, shape index: {0}]   ;;  %s1350_s4 = inlined_call_operand.hbm [shape: f32[12,32], index: 4, kind: output, shape index: {1}]  }
   0x1   :  { %v19_v0 = vld [vmem:[%s1348_s2 + $0x8] sm:$0xff]  ;;  %v18_v1 = vld [vmem:[%s1348_s2] sm:$0xff]  ;;  %137 = vmatprep.mubr.f32.mxu0 %v1084_v3  ;;  %v20_v4 = vld [vmem:[%s1348_s2 + $0x10] sm:$0xff]  ;;  %955 = vmatprep.subr.bf16.mxu1 %v1085_v7 }
   0x2   :  { %v57_v2 = vld [vmem:[%s1346_s0] sm:$0x3]  ;;  %73 = vmatprep.subr.mxu0 %v19_v0  ;;  %v22_v6 = vld [vmem:[%s1348_s2 + $0x30] sm:$0xff] }
   0x3   :  { %v21_v5 = vld [vmem:[%s1348_s2 + $0x20] sm:$0xff]  ;;  %74 = vmatpush1.msra.mxu0 %v18_v1  ;;  %v24_v11 = vld [vmem:[%s1348_s2 + $0x50] sm:$0xff] }
   0x4   :  { %v956_v8 = vpack.c.bf16 %v21_v5, %v20_v4  ;;  %v23_v9 = vld [vmem:[%s1348_s2 + $0x40] sm:$0xff]  ;;  %806 = vmatmul.mubr.msk.f32.vlgmr.msra.gmra.mrb[0].mxu0 %vm69_vm0, %v57_v2 }
   0x5   :  { %v959_v10 = vpack.c.bf16 %v23_v9, %v22_v6  ;;  %v25_v12 = vld [vmem:[%s1348_s2 + $0x60] sm:$0xff] }
   0x6   :  { %957 = vmatpush3.bf16.msra.mxu1 %v956_v8 }
   0x7   :  { %958 = vmatprep.subr.bf16.mxu1 %v1085_v7 }
   0x8   :  { %11 = vsyncpa [#allocation5], 0  ;;  %v962_v13 = vpack.c.bf16 %v25_v12, %v24_v11  ;;  %v26_v14 = vld [vmem:[%s1348_s2 + $0x70] sm:$0xff]  ;;  %v27_v15 = vld [vmem:[%s1348_s2 + $0x80] sm:$0xff]  ;;  %vm1086_vm1 = vmmov 0   ;;  %vm219_vm2 = vcmask 130048   ;;  %v59_v34 = vlaneseq }
   0x9   :  { %v965_v16 = vpack.c.bf16 %v27_v15, %v26_v14  ;;  %v28_v17 = vld [vmem:[%s1348_s2 + $0x90] sm:$0xff]  ;;  %v29_v18 = vld [vmem:[%s1348_s2 + $0xa0] sm:$0xff]  ;;  %898 = vmatprep.mubr.msk.f32.mxu1 %vm1086_vm1, %v1084_v3  ;;  %v216_v33 = vld [vmem:[%s1347_s1 + $0x8] sm:$0xff]  ;;  %s1087_s15 = smov 96   ;;  %v1088_v56 = vmov 1966171168  }
   0xa   :  { %960 = vmatpush3.bf16.msra.mxu1 %v959_v10  ;;  %v968_v19 = vpack.c.bf16 %v29_v18, %v28_v17  ;;  %v30_v20 = vld [vmem:[%s1348_s2 + $0xb0] sm:$0xff]  ;;  %v31_v21 = vld [vmem:[%s1348_s2 + $0xc0] sm:$0xff]  ;;  %v1203_v35 = vshrl.u32 %v59_v34, 7  ;;  %v218_v54 = vld [vmem:[%s1347_s1 + $0x18] sm:$0xf]  ;;  %v331_v57 = vunpack.c.l.s4 %v1088_v56  ;;  %vm325_vm3 = vcmask 261120  }
   0xb   :  { %961 = vmatprep.subr.bf16.mxu1 %v1085_v7  ;;  %v971_v22 = vpack.c.bf16 %v31_v21, %v30_v20  ;;  %v32_v23 = vld [vmem:[%s1348_s2 + $0xd0] sm:$0xff]  ;;  %v33_v24 = vld [vmem:[%s1348_s2 + $0xe0] sm:$0xff]  ;;  %vm447_vm4 = vcmask 31744   ;;  %vm605_vm6 = vcmask 1041409   ;;  %vm679_vm7 = vcmask 254976   ;;  %s1089_s6 = smov 64  }
   0xc   :  { %v974_v25 = vpack.c.bf16 %v33_v24, %v32_v23  ;;  %v34_v26 = vld [vmem:[%s1348_s2 + $0xf0] sm:$0xff]  ;;  %v35_v27 = vld [vmem:[%s1348_s2 + $0x100] sm:$0xff]  ;;  %v61_v36 = vsub.s32 0, %v1203_v35  ;;  %v332_v58 = vunpack.c.0.s8 %v331_v57  ;;  %vm992_vm5 = vmpackc.low %vm447_vm4, %vm447_vm4  ;;  %s1090_s21 = smov 32   ;;  %s1091_s22 = smov [#allocation2]   ;;  %vm327_vm8 = vcmask 257024  }
   0xd   :  { %v36_v28 = vld [vmem:[%s1348_s2 + $0x110] sm:$0xff]  ;;  %v977_v29 = vpack.c.bf16 %v35_v27, %v34_v26  ;;  %v37_v30 = vld [vmem:[%s1348_s2 + $0x120] sm:$0xff]  ;;  %s781_s23 = sshll.u32 %s1091_s22, 4  ;;  %s1092_s24 = smov [#allocation4]   ;;  %s782_s23 = int_to_ptr.vmem [resolvable:$true] %s781_s23 }
   0xe   :  { %963 = vmatpush3.bf16.msra.mxu1 %v962_v13  ;;  %v979_v31 = vpack.c.bf16 %v37_v30, %v36_v28  ;;  %v215_v32 = vld [vmem:[%s1347_s1] sm:$0xff]  ;;  %v1209_v37 = vld [vmem:[%s1348_s2 + $0x1f0] ss:$8 sm:$0x3]  ;;  %v1219_v44 = vld [vmem:[%s1348_s2 + $0x1f2] ss:$0 sm:$0xff]  ;;  %v335_v60 = vsub.s32 %v332_v58, %v1203_v35  ;;  %p1041_p1 = scmp.lt.s32.totalorder %s782_s23, %s782_s23 }
   0xf   :  { %964 = vmatprep.subr.bf16.mxu1 %v1085_v7  ;;  %905 = vmatprep.mubr.msk.f32.mxu0 %vm219_vm2, %v215_v32  ;;  %v62_v38 = vrot.slane %v1209_v37, %v61_v36  ;;  %v38_v45 = vld [vmem:[%s1348_s2 + $0x130] sm:$0xff]  ;;  %v39_v46 = vld [vmem:[%s1348_s2 + $0x140] sm:$0xff]  ;;  %s790_s25 = sshll.u32 %s1092_s24, 4  ;;  %s1314_s25 = int_to_ptr.vmem [resolvable:$true] %s790_s25 }
  0x10   :  { %980 = vmatprep.subr.bf16.mxu0 %v979_v31  ;;  %v983_v48 = vpack.c.bf16 %v39_v46, %v38_v45  ;;  %v217_v51 = vld [vmem:[%s1347_s1 + $0x10] sm:$0xff]  ;;  %v41_v53 = vld [vmem:[%s1348_s2 + $0x160] sm:$0xff] }
  0x11   :  { %982 = vmatpush3.bf16.msra.mxu0 %v979_v31  ;;  %v40_v52 = vld [vmem:[%s1348_s2 + $0x150] sm:$0xff] }
  0x12   :  { %966 = vmatpush3.bf16.msra.mxu1 %v965_v16  ;;  %984 = vmatprep.subr.bf16.mxu0 %v983_v48  ;;  %v987_v55 = vpack.c.bf16 %v41_v53, %v40_v52  ;;  %v52_v59 = vld [vmem:[%s1348_s2 + $0x1f1] ss:$0 sm:$0xff] }
  0x13   :  { %967 = vmatprep.subr.bf16.mxu1 %v1085_v7  ;;  %v42_v58 = vld [vmem:[%s1348_s2 + $0x170] sm:$0xff] }
  0x14   :  { %906 = vmatmul.mubr.msk.f32.vlgmr.msra.gmra.mrb[2].mxu0 %vm219_vm2, %v216_v33 }
  0x15   :  { %986 = vmatpush3.bf16.msra.mxu0 %v983_v48  ;;  %908 = vmatprep.mubr.msk.f32.mxu0 %vm219_vm2, %v217_v51 }
  0x16   :  { %969 = vmatpush3.bf16.msra.mxu1 %v968_v19  ;;  %988 = vmatprep.subr.bf16.mxu0 %v987_v55 }
  0x17   :  { %970 = vmatprep.subr.bf16.mxu1 %v1085_v7 }
  0x18   :  { %909 = vmatmul.mubr.msk.f32.gmra.mrb[4].mxu0 %vm219_vm2, %v218_v54 }
  0x19   :  { %990 = vmatpush3.bf16.msra.mxu0 %v987_v55 }
  0x1a   :  { %972 = vmatpush3.bf16.msra.mxu1 %v971_v22  ;;  %993 = vmatprep.subr.msk.bf16.mxu0 %vm992_vm5, %v983_v48 }
  0x1b   :  { %973 = vmatprep.subr.bf16.mxu1 %v1085_v7 }
  0x1e   :  { %975 = vmatpush3.bf16.msra.mxu1 %v974_v25 }
  0x1f   :  { %976 = vmatprep.subr.bf16.mxu1 %v1085_v7 }
  0x22   :  { %978 = vmatpush3.bf16.msra.mxu1 %v977_v29 }
  0x23   :  { %1009 = vmatprep.subr.bf16.mxu1 %v1085_v7 }
  0xd7   :  { %v139_v39 = vpop.f32.mrb[0].mxu0 }
  0xd8   :  { %v140_v40 = vadd.f32 %v139_v39, %v62_v38  ;;  %v1212_v41 = vpop.f32.mrb[1].mxu0 }
  0xda   :  { %v144_v42 = vmax.f32 %v140_v40, 0.0 }
  0xdc   :  { %899 = vmatmul.mubr.f32.vlgmr.msra.gmra.mrb[0].mxu1 %v144_v42 }
  0xdd   :  { %952 = vmatprep.mubr.msk.f32.mxu1 %vm1086_vm1, %v1084_v3 }
  0xe7   :  { %v907_v43 = vpop.f32.mrb[2].mxu0 }
  0xe8   :  { %v298_v47 = vpop.f32.mrb[3].mxu0  ;;  %v304_v50 = vadd.f32 %v907_v43, %v1219_v44 }
  0xe9   :  { %v299_v49 = vadd.f32 %v298_v47, %v1219_v44 }
  0xeb   :  { %581 = vrot.lane.b32.xlu0 %v299_v49, %s1087_s15  ;;  %v1249_v10 = vpop.f32.mrb[4].mxu0 }
  0xec   :  { %v1251_v11 = vpop.f32.mrb[5].mxu0 }
  0xef   :  { %583 = vrot.lane.b32.xlu0 %v304_v50, %s1087_s15 }
 0x1af   :  { %v211_v61 = vpop.f32.mrb[0].mxu1 }
 0x1b0   :  { %v212_v62 = vadd.f32 %v211_v61, %v52_v59  ;;  %v900_v63 = vpop.f32.mrb[1].mxu1  ;;  %v43_v59 = vld [vmem:[%s1348_s2 + $0x180] sm:$0xff]  ;;  %v44_v61 = vld [vmem:[%s1348_s2 + $0x190] sm:$0xff] }
 0x1b1   :  { %v582_v63 = vpop.permute.xlu0 %581 }
 0x1b2   :  { %v336_v0 = vrot.slane %v212_v62, %v335_v60 }
 0x1b4   :  { %v337_v1 = vcombine.high %v336_v0, %v336_v0  ;;  %v344_v2 = vrot.slane %v336_v0, %v335_v60 }
 0x1b5   :  { %v584_v0 = vpop.permute.xlu0 %583 }
 0x1b6   :  { %v351_v4 = vrot.slane %v337_v1, %v335_v60  ;;  %v355_v5 = vrot.slane %v344_v2, %v61_v36  ;;  %v1004_v60 = vpack.c.bf16 %v43_v59, %v42_v58 }
 0x1b8   :  { %v359_v6 = vrot.slane %v351_v4, %v61_v36  ;;  %v362_v8 = vmul.f32 %v355_v5, %v299_v49 }
 0x1ba   :  { %v363_v9 = vmul.f32 %v359_v6, %v304_v50  ;;  %919 = vmatprep.mubr.msk.f32.mxu0 %vm325_vm3, %v362_v8 }
 0x1bc   :  { %920 = vmatmul.mubr.msk.f32.vlgmr.msra.gmra.mrb[6].mxu0 %vm325_vm3, %v363_v9 }
 0x1bd   :  { %996 = vmatpush3.bf16.xpose.msk.msra.mxu0 %vm992_vm5, %v983_v48 }
 0x1be   :  { %999 = vmatprep.subr.msk.bf16.mxu0 %vm992_vm5, %v987_v55 }
 0x1c5   :  { %1002 = vmatpush3.bf16.xpose.msk.msra.mxu0 %vm992_vm5, %v987_v55 }
 0x1c6   :  { %1003 = vmatprep.subr.bf16.mxu0 %v1085_v7 }
 0x28f   :  { %v921_v12 = vpop.f32.mrb[6].mxu0 }
 0x290   :  { %v446_v13 = vmul.f32 0.35355338, %v921_v12  ;;  %v436_v14 = vpop.f32.mrb[7].mxu0 }
 0x291   :  { %v445_v15 = vmul.f32 0.35355338, %v436_v14 }
 0x292   :  { %v455_v16 = vsel %vm447_vm4, %v446_v13, -inf }
 0x293   :  { %v456_v17 = vrot.slane %v455_v16, 4  ;;  %v448_v18 = vsel %vm447_vm4, %v445_v15, -inf }
 0x294   :  { %v449_v19 = vrot.slane %v448_v18, 4 }
 0x295   :  { %v457_v20 = vmax.f32 %v455_v16, %v456_v17 }
 0x296   :  { %v450_v21 = vmax.f32 %v448_v18, %v449_v19 }
 0x297   :  { %v458_v22 = vrot.slane %v457_v20, 2 }
 0x298   :  { %v451_v23 = vrot.slane %v450_v21, 2 }
 0x299   :  { %v459_v24 = vmax.f32 %v457_v20, %v458_v22 }
 0x29a   :  { %v452_v25 = vmax.f32 %v450_v21, %v451_v23 }
 0x29b   :  { %v460_v26 = vrot.slane %v459_v24, 1 }
 0x29c   :  { %v453_v27 = vrot.slane %v452_v25, 1 }
 0x29d   :  { %v461_v28 = vmax.f32 %v459_v24, %v460_v26  ;;  %v65_v24 = vsub.s32 1, %v1203_v35  ;;  %v46_v35 = vld [vmem:[%s1348_s2 + $0x1b0] sm:$0xff] }
 0x29e   :  { %v454_v29 = vmax.f32 %v452_v25, %v453_v27 }
 0x29f   :  { %v463_v30 = vsub.f32 %v446_v13, %v461_v28  ;;  %v66_v25 = vrot.slane %v1209_v37, %v65_v24  ;;  %v47_v37 = vld [vmem:[%s1348_s2 + $0x1c0] sm:$0xff] }
 0x2a0   :  { %v462_v31 = vsub.f32 %v445_v15, %v454_v29 }
 0x2a1   :  { %v466_v32 = vmul.f32 1.442695, %v463_v30  ;;  %v142_v26 = vadd.f32 %v1212_v41, %v66_v25  ;;  %v1010_v41 = vpack.c.bf16 %v47_v37, %v46_v35 }
 0x2a2   :  { %v464_v33 = vmul.f32 1.442695, %v462_v31 }
 0x2a3   :  { %1026 = vpow2.f32 %v466_v32  ;;  %1011 = vmatpush3.bf16.msra.mxu1 %v1010_v41 }
 0x2a4   :  { %1028 = vpow2.f32 %v464_v33  ;;  %1012 = vmatprep.subr.bf16.mxu1 %v1085_v7 }
 0x2ad   :  { %v1027_v34 = vpop.eup %1026 }
 0x2ae   :  { %v1029_v36 = vpop.eup %1028  ;;  %v475_v38 = vsel %vm447_vm4, %v1027_v34, 0.0 }
 0x2af   :  { %v476_v39 = vrot.slane %v475_v38, 4  ;;  %v468_v40 = vsel %vm447_vm4, %v1029_v36, 0.0 }
 0x2b0   :  { %v469_v42 = vrot.slane %v468_v40, 4 }
 0x2b1   :  { %v477_v43 = vadd.f32 %v476_v39, %v475_v38  ;;  %v309_v38 = vadd.f32 %v1251_v11, %v1219_v44  ;;  %v48_v39 = vld [vmem:[%s1348_s2 + $0x1d0] sm:$0xff]  ;;  %v49_v11 = vld [vmem:[%s1348_s2 + $0x1e0] sm:$0xff] }
 0x2b2   :  { %v470_v45 = vadd.f32 %v469_v42, %v468_v40  ;;  %v1013_v40 = vpack.c.bf16 %v49_v11, %v48_v39 }
 0x2b3   :  { %v478_v46 = vrot.slane %v477_v43, 2 }
 0x2b4   :  { %v471_v47 = vrot.slane %v470_v45, 2  ;;  %1014 = vmatpush3.bf16.msra.mxu1 %v1013_v40 }
 0x2b5   :  { %v479_v48 = vadd.f32 %v478_v46, %v477_v43 }
 0x2b6   :  { %v472_v49 = vadd.f32 %v471_v47, %v470_v45 }
 0x2b7   :  { %v480_v50 = vrot.slane %v479_v48, 1 }
 0x2b8   :  { %v473_v51 = vrot.slane %v472_v49, 1 }
 0x2b9   :  { %v481_v52 = vadd.f32 %v480_v50, %v479_v48 }
 0x2ba   :  { %v474_v53 = vadd.f32 %v473_v51, %v472_v49  ;;  %v55_v49 = vld [vmem:[%s1348_s2 + $0x1f4] ss:$0 sm:$0xff] }
 0x2bb   :  { %1030 = vrcp.f32 %v481_v52  ;;  %v56_v52 = vld [vmem:[%s1348_s2 + $0x1f5] ss:$0 sm:$0xff] }
 0x2bc   :  { %1032 = vrcp.f32 %v474_v53 }
 0x2c5   :  { %v1031_v54 = vpop.eup %1030 }
 0x2c6   :  { %v1033_v55 = vpop.eup %1032  ;;  %v485_v57 = vmul.f32 %v1031_v54, %v1027_v34 }
 0x2c7   :  { %v483_v56 = vmul.f32 %v1033_v55, %v1029_v36 }
 0x2c9   :  { %930 = vmatprep.mubr.msk.f32.mxu0 %vm447_vm4, %v483_v56  ;;  %v314_v56 = vadd.f32 %v1249_v10, %v1219_v44 }
 0x2ca   :  { %931 = vmatmul.mubr.msk.f32.vlgmr.msra.gmra.mrb[8].mxu0 %vm447_vm4, %v485_v57 }
 0x2cb   :  { %941 = vmatprep.mubr.msk.f32.mxu0 %vm1086_vm1, %v1084_v3  ;;  %1005 = vmatpush3.bf16.msra.mxu0 %v1004_v60  ;;  %v45_v3 = vld [vmem:[%s1348_s2 + $0x1a0] sm:$0xff] }
 0x2cc   :  { %1006 = vmatprep.subr.bf16.mxu0 %v1085_v7  ;;  %v1007_v62 = vpack.c.bf16 %v45_v3, %v44_v61  ;;  %v54_v7 = vld [vmem:[%s1348_s2 + $0x1f3] ss:$0 sm:$0xff]  ;;  %s1036_s2 = scalar_lea.vmem %s782_s23, 32 }
 0x2cd   :  { %p1037_p0 = scmp.ne.s32.totalorder %s782_s23, %s1036_s2  ;;  %p1042_p2 = scmp.lt.s32.totalorder %s1036_s2, %s1036_s2 }
 0x2cf   :  { %1008 = vmatpush3.bf16.msra.mxu0 %v1007_v62  ;;  %p1043_p3 = por %p1042_p2, %p1041_p1 }
 0x2d1   :  { %p1044_p4 = pnand %p1043_p3, %p1037_p0 }
 0x39d   :  { %v932_v1 = vpop.f32.mrb[8].mxu0 }
 0x39e   :  { %v588_v2 = vmul.f32 %v932_v1, %v584_v0  ;;  %v570_v4 = vpop.f32.mrb[9].mxu0 }
 0x39f   :  { %v587_v5 = vmul.f32 %v582_v63, %v570_v4 }
 0x3a0   :  { %v596_v6 = vsel %vm325_vm3, %v588_v2, 0.0 }
 0x3a1   :  { %v597_v8 = vrot.slane %v596_v6, 4  ;;  %v589_v9 = vsel %vm325_vm3, %v587_v5, 0.0 }
 0x3a2   :  { %v590_v12 = vrot.slane %v589_v9, 4 }
 0x3a3   :  { %v598_v13 = vadd.f32 %v597_v8, %v596_v6 }
 0x3a4   :  { %v591_v14 = vadd.f32 %v590_v12, %v589_v9 }
 0x3a5   :  { %v599_v15 = vrot.slane %v598_v13, 2 }
 0x3a6   :  { %v592_v16 = vrot.slane %v591_v14, 2 }
 0x3a7   :  { %v600_v17 = vadd.f32 %v599_v15, %v598_v13 }
 0x3a8   :  { %v593_v18 = vadd.f32 %v592_v16, %v591_v14 }
 0x3a9   :  { %v601_v19 = vrot.slane %v600_v17, 1 }
 0x3aa   :  { %v594_v20 = vrot.slane %v593_v18, 1 }
 0x3ab   :  { %v602_v21 = vadd.f32 %v601_v19, %v600_v17 }
 0x3ac   :  { %v595_v22 = vadd.f32 %v594_v20, %v593_v18 }
 0x3ae   :  { %v606_v23 = vsel %vm605_vm6, %v602_v21, %v595_v22 }
 0x3af   :  { %942 = vmatmul.mubr.msk.f32.vlgmr.msra.gmra.mrb[10].mxu0 %vm325_vm3, %v606_v23 }
 0x482   :  { %v675_v27 = vpop.f32.mrb[10].mxu0 }
 0x483   :  { %v676_v28 = vadd.f32 %v675_v27, %v142_v26  ;;  %v943_v29 = vpop.f32.mrb[11].mxu0 }
 0x485   :  { %v680_v30 = vsel %vm679_vm7, %v676_v28, 0.0 }
 0x486   :  { %681 = vadd.xlane.f32.xlu1 %v680_v30 }
 0x513   :  { %v682_v31 = vpop.xlane.xlu1 %681 }
 0x514   :  { %v684_v32 = vmul.f32 0.03125, %v682_v31 }
 0x516   :  { %v685_v33 = vsub.f32 %v676_v28, %v684_v32 }
 0x518   :  { %v686_v34 = vmul.f32 %v685_v33, %v685_v33 }
 0x51a   :  { %v687_v36 = vsel %vm679_vm7, %v686_v34, 0.0 }
 0x51b   :  { %688 = vadd.xlane.f32.xlu1 %v687_v36 }
 0x52c   :  { %319 = vrot.lane.b32.xlu1 %v309_v38, %s1089_s6 }
 0x5a8   :  { %v689_v42 = vpop.xlane.xlu1 %688 }
 0x5a9   :  { %v690_v43 = vmul.f32 0.03125, %v689_v42 }
 0x5ab   :  { %v691_v45 = vadd.f32 1e-05, %v690_v43 }
 0x5ac   :  { %v320_v46 = vpop.permute.xlu1 %319 }
 0x5ad   :  { %1034 = vrsqrt.f32 %v691_v45  ;;  %326 = vst.msk [vmem:[#allocation4] sm:$0xff] %vm325_vm3, %v320_v46 }
 0x5b7   :  { %v1035_v47 = vpop.eup %1034 }
 0x5b8   :  { %v693_v48 = vmul.f32 %v1035_v47, %v685_v33 }
 0x5ba   :  { %v694_v50 = vmul.f32 %v693_v48, %v54_v7 }
 0x5bc   :  { %v695_v51 = vadd.f32 %v694_v50, %v55_v49 }
 0x5be   :  { %953 = vmatmul.mubr.msk.f32.vlgmr.msra.gmra.mrb[2].mxu1 %vm325_vm3, %v695_v51 }
 0x691   :  { %v765_v53 = vpop.f32.mrb[2].mxu1 }
 0x692   :  { %v766_v54 = vadd.f32 %v765_v53, %v56_v52  ;;  %v954_v55 = vpop.f32.mrb[3].mxu1 }
 0x694   :  { %770 = vrot.lane.b32.xlu0 %v766_v54, %s1090_s21 }
 0x698   :  { %321 = vrot.lane.b32.xlu0 %v314_v56, %s1089_s6 }
 0x706   :  { %v771_v57 = vpop.permute.xlu0 %770 }
 0x707   :  { %v773_v58 = vsel %vm325_vm3, %v695_v51, %v771_v57 }
 0x708   :  { %774 = vst [vmem:[#allocation2] sm:$0x3] %v773_v58 }
 0x709   :  { %1047 = shalt.err (!%p1044_p4)
}
 0x70a   :  { %s1048_s0 = scalar_lea.hbm %s1349_s3, 32 }
 0x70b   :  { %p1049_p5 = scmp.ne.s32.totalorder %s1349_s3, %s1048_s0  ;;  %p1052_p6 = scmp.lt.u32.totalorder %s1048_s0, %s1349_s3 }
 0x70d   :  { %p1054_p7 = pnand %p1052_p6, %p1049_p5 }
 0x70f   :  { %1057 = shalt.err (!%p1054_p7)
}
 0x710   :  { %784 = dma.vmem_to_hbm [thread:$0]  %s782_s23, 32, %s1349_s3, [#allocation3]   ;;  %v322_v44 = vpop.permute.xlu0 %321 }
 0x711   :  { %328 = vst.msk [vmem:[#allocation4 + $0x8] sm:$0xf] %vm327_vm8, %v322_v44  ;;  %s1058_s7 = scalar_lea.vmem %s1314_s25, 256  ;;  %p1063_p9 = scmp.lt.s32.totalorder %s1314_s25, %s1314_s25 }
 0x712   :  { %p1059_p8 = scmp.ne.s32.totalorder %s1314_s25, %s1058_s7  ;;  %p1064_p10 = scmp.lt.s32.totalorder %s1058_s7, %s1058_s7 }
 0x714   :  { %p1065_p11 = por %p1064_p10, %p1063_p9 }
 0x716   :  { %p1066_p12 = pnand %p1065_p11, %p1059_p8 }
 0x718   :  { %1069 = shalt.err (!%p1066_p12)
}
 0x719   :  { %s1070_s10 = scalar_lea.hbm %s1350_s4, 256 }
 0x71a   :  { %p1071_p13 = scmp.ne.s32.totalorder %s1350_s4, %s1070_s10  ;;  %p1074_p0 = scmp.lt.u32.totalorder %s1070_s10, %s1350_s4 }
 0x71c   :  { %p1076_p1 = pnand %p1074_p0, %p1071_p13 }
 0x71e   :  { %1079 = shalt.err (!%p1076_p1)
}
 0x71f   :  { %s1093_s14 = smov 128   ;;  %s1094_s15 = smov 8  }
 0x720   :  { %796 = dma.vmem_to_hbm [thread:$0]  %s1314_s25, 256, %s1350_s4, [#allocation5], %s1093_s14, %s1093_s14, %s1094_s15  }
 0x721   :  { %1080 = dma.done.wait [#allocation3], 32  }
 0x722   :  { %1081 = vsyncadd [#allocation3], 4294967264 }
 0x723   :  { %1082 = dma.done.wait [#allocation5], 256  }
 0x724   :  { %1083 = vsyncadd [#allocation5], 4294967040 }
 0x725   :  { %803 = vsyncpa [#allocation3], 1 }
 0x726   :  { %804 = vsyncpa [#allocation5], 1 }

</bundles_post_ra>
